<compile_context>
chip_gen: v7x
topology: tpu7x:2x2x1
jax: 0.10.0
libtpu: 0.0.40
codegen_flags: <defaults>
</compile_context>

<pallas_src>
import functools

import jax
import jax.numpy as jnp
from jax.experimental import pallas as pl
from jax.experimental.pallas import tpu as pltpu


def _round_up(x, m):
    return ((x + m - 1) // m) * m


# --------------------------------------------------------------------------
# Kernel
# --------------------------------------------------------------------------
def autoencoder_kernel(x_ref, w_ref, b_ref, enc_ref, dec_ref):
    """x_ref: (tile, D) compute dtype; w_ref: (6, D, D) compute dtype;
    b_ref: (8, D) f32; enc_ref/dec_ref: (tile, D) f32."""
    compute_dtype = w_ref.dtype

    def dense(h, idx, relu):
        # MXU matmul in compute dtype, f32 accumulation; bias/ReLU in f32.
        y = jnp.dot(
            h.astype(compute_dtype),
            w_ref[idx],
            preferred_element_type=jnp.float32,
        )
        y = y + b_ref[idx : idx + 1, :]
        if relu:
            y = jnp.maximum(y, 0.0)
        return y

    # ---- encoder ----
    h = dense(x_ref[...], 0, True)
    h = dense(h, 1, True)
    enc = dense(h, 2, False)
    enc_ref[...] = enc.astype(enc_ref.dtype)

    # ---- decoder ----
    d = dense(enc, 3, True)
    d = dense(d, 4, True)
    dec = dense(d, 5, False)
    dec_ref[...] = dec.astype(dec_ref.dtype)


# --------------------------------------------------------------------------
# Parameter packing (done once, wrapper side)
# --------------------------------------------------------------------------
def pack_params(params, input_dim, latent_dim, compute_dtype=jnp.float32):
    """Zero-pad all six layers to a common (D, D) shape and stack them.

    Returns (w_stack [6,D,D] compute_dtype, b_stack [8,D] f32, D)."""
    D = max(128, _round_up(input_dim, 128), _round_up(latent_dim, 128))
    dims = [
        (input_dim, 128),  # encoder 0
        (128, 64),         # encoder 2
        (64, latent_dim),  # encoder 4
        (latent_dim, 64),  # decoder 0
        (64, 128),         # decoder 2
        (128, input_dim),  # decoder 4
    ]
    w_stack = jnp.zeros((6, D, D), compute_dtype)
    b_stack = jnp.zeros((8, D), jnp.float32)  # 8 sublanes (rows 0..5 used)
    for i, (fi, fo) in enumerate(dims):
        w = params[f"w{i + 1}"].astype(compute_dtype)
        b = params[f"b{i + 1}"].astype(jnp.float32).reshape(-1)
        w_stack = w_stack.at[i, :fi, :fo].set(w)
        b_stack = b_stack.at[i, :fo].set(b)
    return w_stack, b_stack, D


# --------------------------------------------------------------------------
# Forward wrapper
# --------------------------------------------------------------------------
def autoencoder_forward(x, w_stack, b_stack, *, input_dim, latent_dim,
                        batch_tile=1024):
    """x: [B, input_dim] float32. Returns (encoded [B, latent], decoded [B, in])."""
    B = x.shape[0]
    D = w_stack.shape[-1]
    compute_dtype = w_stack.dtype
    itemsize = jnp.dtype(compute_dtype).itemsize

    # Batch tiling: large tiles amortize the ~0.35us/step overhead; small
    # batches collapse to a single step.  Pad-and-slice instead of asserting.
    tile = min(batch_tile, _round_up(B, 8))
    B_pad = _round_up(B, tile)
    grid = (B_pad // tile,)

    # Pad the input once to (B_pad, D) in the compute dtype (zero pad lanes).
    x_p = jnp.pad(x.astype(compute_dtype), ((0, B_pad - B), (0, D - input_dim)))

    out_shapes = (
        jax.ShapeDtypeStruct((B_pad, D), jnp.float32),
        jax.ShapeDtypeStruct((B_pad, D), jnp.float32),
    )

    def x_map(i):
        return (i, 0)

    # VMEM budget: double-buffered x + two f32 outputs, resident weights,
    # plus headroom for intermediate activations.
    need = (
        2 * tile * D * itemsize          # x, double-buffered
        + 2 * 2 * tile * D * 4           # enc + dec outputs, double-buffered
        + 6 * D * D * itemsize + 8 * D * 4   # resident weight stack + biases
        + 8 * tile * D * 4               # intermediates headroom
    )
    vmem_limit = int(min(max(2 * need, 32 * 1024 * 1024), 48 * 1024 * 1024))

    cost = pl.CostEstimate(
        flops=2 * B_pad * D * D * 6,
        transcendentals=0,
        bytes_accessed=(
            B_pad * D * itemsize          # x
            + 6 * D * D * itemsize        # weights
            + 8 * D * 4                   # biases
            + 2 * B_pad * D * 4           # enc + dec
        ),
    )

    fn = pl.pallas_call(
        autoencoder_kernel,
        out_shape=out_shapes,
        grid_spec=pltpu.PrefetchScalarGridSpec(
            num_scalar_prefetch=0,
            grid=grid,
            in_specs=[
                pl.BlockSpec((tile, D), x_map),
                pl.BlockSpec((6, D, D), lambda i: (0, 0, 0)),  # resident weights
                pl.BlockSpec((8, D), lambda i: (0, 0)),        # resident biases
            ],
            out_specs=[
                pl.BlockSpec((tile, D), x_map),
                pl.BlockSpec((tile, D), x_map),
            ],
        ),
        compiler_params=pltpu.CompilerParams(
            dimension_semantics=("parallel",),
            vmem_limit_bytes=vmem_limit,
        ),
        cost_estimate=cost,
    )
    enc_full, dec_full = fn(x_p, w_stack, b_stack)

    # Slice away batch padding and padded lanes (lane-dense inside the kernel).
    encoded = enc_full[:B, :latent_dim]
    decoded = dec_full[:B, :input_dim]
    return encoded, decoded


# --------------------------------------------------------------------------
# Init + pure-JAX reference (mirrors the PyTorch forward)
# --------------------------------------------------------------------------
def init_params(key, input_dim, latent_dim):
    """Weights stored as (in_features, out_features); biases as (1, out)."""
    dims = [
        (input_dim, 128),
        (128, 64),
        (64, latent_dim),
        (latent_dim, 64),
        (64, 128),
        (128, input_dim),
    ]
    params = {}
    keys = jax.random.split(key, 2 * len(dims))
    for idx, (fan_in, fan_out) in enumerate(dims):
        bound = 1.0 / jnp.sqrt(jnp.float32(fan_in))
        params[f"w{idx + 1}"] = jax.random.uniform(
            keys[2 * idx], (fan_in, fan_out), jnp.float32, -bound, bound
        )
        params[f"b{idx + 1}"] = jax.random.uniform(
            keys[2 * idx + 1], (1, fan_out), jnp.float32, -bound, bound
        )
    return params


def reference_forward(x, params):
    h = jnp.maximum(x @ params["w1"] + params["b1"], 0.0)
    h = jnp.maximum(h @ params["w2"] + params["b2"], 0.0)
    enc = h @ params["w3"] + params["b3"]
    d = jnp.maximum(enc @ params["w4"] + params["b4"], 0.0)
    d = jnp.maximum(d @ params["w5"] + params["b5"], 0.0)
    dec = d @ params["w6"] + params["b6"]
    return enc, dec


# --------------------------------------------------------------------------
if __name__ == "__main__":
    input_dim = 32
    latent_dim = 8
    batch = 16

    key = jax.random.PRNGKey(0)
    k_x, k_p = jax.random.split(key)
    x = jax.random.normal(k_x, (batch, input_dim), dtype=jnp.float32)
    params = init_params(k_p, input_dim, latent_dim)
    enc_ref, dec_ref = reference_forward(x, params)

    # ---- f32 compute path (tight check; recommended for v5e) ----
    w32, b32, _ = pack_params(params, input_dim, latent_dim, jnp.float32)
    encoded, decoded = autoencoder_forward(
        x, w32, b32, input_dim=input_dim, latent_dim=latent_dim, batch_tile=1024
    )
    encoded, decoded = jax.block_until_ready((encoded, decoded))
    assert encoded.shape == (batch, latent_dim)
    assert decoded.shape == (batch, input_dim)
    assert jnp.allclose(encoded, enc_ref, atol=1e-5, rtol=1e-5)
    assert jnp.allclose(decoded, dec_ref, atol=1e-5, rtol=1e-5)

    # ---- bf16 matmul path (recommended for v6e/v7x MXU; f32 accumulation) ----
    wbf, bbf, _ = pack_params(params, input_dim, latent_dim, jnp.bfloat16)
    enc_bf, dec_bf = autoencoder_forward(
        x, wbf, bbf, input_dim=input_dim, latent_dim=latent_dim, batch_tile=1024
    )
    enc_bf, dec_bf = jax.block_until_ready((enc_bf, dec_bf))
    assert jnp.allclose(enc_bf, enc_ref, atol=5e-2, rtol=5e-2)
    assert jnp.allclose(dec_bf, dec_ref, atol=5e-2, rtol=5e-2)

    print("KERNEL_OK")
</pallas_src>

<mosaic_0001>
module attributes {stable_mosaic.version = 11 : i64} {
  func.func @autoencoder_kernel(%arg0: i32, %arg1: memref<16x128xf32, #tpu.memory_space<vmem>>, %arg2: memref<6x128x128xf32, #tpu.memory_space<vmem>>, %arg3: memref<8x128xf32, #tpu.memory_space<vmem>>, %arg4: memref<16x128xf32, #tpu.memory_space<vmem>>, %arg5: memref<16x128xf32, #tpu.memory_space<vmem>>) attributes {dimension_semantics = [#tpu.dimension_semantics<parallel>], iteration_bounds = array<i64: 1>, scalar_prefetch = 0 : i64, scratch_operands = 0 : i64, tpu.core_type = #tpu.core_type<tc>, window_params = [{transform_indices = @transform_0, window_bounds = array<i64: 16, 128>}, {pipeline_mode = #tpu.pipeline_mode<synchronous>, transform_indices = @transform_1, window_bounds = array<i64: 6, 128, 128>}, {pipeline_mode = #tpu.pipeline_mode<synchronous>, transform_indices = @transform_2, window_bounds = array<i64: 8, 128>}, {transform_indices = @transform_3, window_bounds = array<i64: 16, 128>}, {transform_indices = @transform_4, window_bounds = array<i64: 16, 128>}]} {
    %c0 = arith.constant 0 : index
    %c0_0 = arith.constant 0 : index
    %0 = vector.load %arg1[%c0, %c0_0] : memref<16x128xf32, #tpu.memory_space<vmem>>, vector<16x128xf32>
    %c0_1 = arith.constant 0 : index
    %c0_2 = arith.constant 0 : index
    %c0_3 = arith.constant 0 : index
    %1 = vector.load %arg2[%c0_1, %c0_2, %c0_3] : memref<6x128x128xf32, #tpu.memory_space<vmem>>, vector<1x128x128xf32>
    %2 = vector.shape_cast %1 : vector<1x128x128xf32> to vector<128x128xf32>
    %cst = arith.constant dense<0.000000e+00> : vector<16x128xf32>
    %3 = tpu.matmul %0, %2, %cst {dimension_numbers = #tpu.dot_dimension_numbers<[1], [0], [0], [1], [0, 0, 1, 1], [], []>} : vector<16x128xf32>, vector<128x128xf32>, vector<16x128xf32> -> vector<16x128xf32>
    %c0_4 = arith.constant 0 : index
    %c0_5 = arith.constant 0 : index
    %4 = vector.load %arg3[%c0_4, %c0_5] : memref<8x128xf32, #tpu.memory_space<vmem>>, vector<1x128xf32>
    %5 = vector.broadcast %4 : vector<1x128xf32> to vector<16x128xf32>
    %6 = arith.addf %3, %5 : vector<16x128xf32>
    %cst_6 = arith.constant 0.000000e+00 : f32
    %7 = vector.broadcast %cst_6 : f32 to vector<16x128xf32>
    %8 = arith.maximumf %6, %7 : vector<16x128xf32>
    %c1 = arith.constant 1 : index
    %c0_7 = arith.constant 0 : index
    %c0_8 = arith.constant 0 : index
    %9 = vector.load %arg2[%c1, %c0_7, %c0_8] : memref<6x128x128xf32, #tpu.memory_space<vmem>>, vector<1x128x128xf32>
    %10 = vector.shape_cast %9 : vector<1x128x128xf32> to vector<128x128xf32>
    %cst_9 = arith.constant dense<0.000000e+00> : vector<16x128xf32>
    %11 = tpu.matmul %8, %10, %cst_9 {dimension_numbers = #tpu.dot_dimension_numbers<[1], [0], [0], [1], [0, 0, 1, 1], [], []>} : vector<16x128xf32>, vector<128x128xf32>, vector<16x128xf32> -> vector<16x128xf32>
    %c1_10 = arith.constant 1 : index
    %c0_11 = arith.constant 0 : index
    %12 = vector.load %arg3[%c1_10, %c0_11] : memref<8x128xf32, #tpu.memory_space<vmem>>, vector<1x128xf32>
    %13 = vector.broadcast %12 : vector<1x128xf32> to vector<16x128xf32>
    %14 = arith.addf %11, %13 : vector<16x128xf32>
    %cst_12 = arith.constant 0.000000e+00 : f32
    %15 = vector.broadcast %cst_12 : f32 to vector<16x128xf32>
    %16 = arith.maximumf %14, %15 : vector<16x128xf32>
    %c2 = arith.constant 2 : index
    %c0_13 = arith.constant 0 : index
    %c0_14 = arith.constant 0 : index
    %17 = vector.load %arg2[%c2, %c0_13, %c0_14] : memref<6x128x128xf32, #tpu.memory_space<vmem>>, vector<1x128x128xf32>
    %18 = vector.shape_cast %17 : vector<1x128x128xf32> to vector<128x128xf32>
    %cst_15 = arith.constant dense<0.000000e+00> : vector<16x128xf32>
    %19 = tpu.matmul %16, %18, %cst_15 {dimension_numbers = #tpu.dot_dimension_numbers<[1], [0], [0], [1], [0, 0, 1, 1], [], []>} : vector<16x128xf32>, vector<128x128xf32>, vector<16x128xf32> -> vector<16x128xf32>
    %c2_16 = arith.constant 2 : index
    %c0_17 = arith.constant 0 : index
    %20 = vector.load %arg3[%c2_16, %c0_17] : memref<8x128xf32, #tpu.memory_space<vmem>>, vector<1x128xf32>
    %21 = vector.broadcast %20 : vector<1x128xf32> to vector<16x128xf32>
    %22 = arith.addf %19, %21 : vector<16x128xf32>
    %c0_18 = arith.constant 0 : index
    %c0_19 = arith.constant 0 : index
    %23 = vector.load %arg4[%c0_18, %c0_19] : memref<16x128xf32, #tpu.memory_space<vmem>>, vector<16x128xf32>
    tpu.vector_store %arg4[%c0_18, %c0_19], %22 {strides = array<i32>} : memref<16x128xf32, #tpu.memory_space<vmem>>, vector<16x128xf32>,
    %c3 = arith.constant 3 : index
    %c0_20 = arith.constant 0 : index
    %c0_21 = arith.constant 0 : index
    %24 = vector.load %arg2[%c3, %c0_20, %c0_21] : memref<6x128x128xf32, #tpu.memory_space<vmem>>, vector<1x128x128xf32>
    %25 = vector.shape_cast %24 : vector<1x128x128xf32> to vector<128x128xf32>
    %cst_22 = arith.constant dense<0.000000e+00> : vector<16x128xf32>
    %26 = tpu.matmul %22, %25, %cst_22 {dimension_numbers = #tpu.dot_dimension_numbers<[1], [0], [0], [1], [0, 0, 1, 1], [], []>} : vector<16x128xf32>, vector<128x128xf32>, vector<16x128xf32> -> vector<16x128xf32>
    %c3_23 = arith.constant 3 : index
    %c0_24 = arith.constant 0 : index
    %27 = vector.load %arg3[%c3_23, %c0_24] : memref<8x128xf32, #tpu.memory_space<vmem>>, vector<1x128xf32>
    %28 = vector.broadcast %27 : vector<1x128xf32> to vector<16x128xf32>
    %29 = arith.addf %26, %28 : vector<16x128xf32>
    %cst_25 = arith.constant 0.000000e+00 : f32
    %30 = vector.broadcast %cst_25 : f32 to vector<16x128xf32>
    %31 = arith.maximumf %29, %30 : vector<16x128xf32>
    %c4 = arith.constant 4 : index
    %c0_26 = arith.constant 0 : index
    %c0_27 = arith.constant 0 : index
    %32 = vector.load %arg2[%c4, %c0_26, %c0_27] : memref<6x128x128xf32, #tpu.memory_space<vmem>>, vector<1x128x128xf32>
    %33 = vector.shape_cast %32 : vector<1x128x128xf32> to vector<128x128xf32>
    %cst_28 = arith.constant dense<0.000000e+00> : vector<16x128xf32>
    %34 = tpu.matmul %31, %33, %cst_28 {dimension_numbers = #tpu.dot_dimension_numbers<[1], [0], [0], [1], [0, 0, 1, 1], [], []>} : vector<16x128xf32>, vector<128x128xf32>, vector<16x128xf32> -> vector<16x128xf32>
    %c4_29 = arith.constant 4 : index
    %c0_30 = arith.constant 0 : index
    %35 = vector.load %arg3[%c4_29, %c0_30] : memref<8x128xf32, #tpu.memory_space<vmem>>, vector<1x128xf32>
    %36 = vector.broadcast %35 : vector<1x128xf32> to vector<16x128xf32>
    %37 = arith.addf %34, %36 : vector<16x128xf32>
    %cst_31 = arith.constant 0.000000e+00 : f32
    %38 = vector.broadcast %cst_31 : f32 to vector<16x128xf32>
    %39 = arith.maximumf %37, %38 : vector<16x128xf32>
    %c5 = arith.constant 5 : index
    %c0_32 = arith.constant 0 : index
    %c0_33 = arith.constant 0 : index
    %40 = vector.load %arg2[%c5, %c0_32, %c0_33] : memref<6x128x128xf32, #tpu.memory_space<vmem>>, vector<1x128x128xf32>
    %41 = vector.shape_cast %40 : vector<1x128x128xf32> to vector<128x128xf32>
    %cst_34 = arith.constant dense<0.000000e+00> : vector<16x128xf32>
    %42 = tpu.matmul %39, %41, %cst_34 {dimension_numbers = #tpu.dot_dimension_numbers<[1], [0], [0], [1], [0, 0, 1, 1], [], []>} : vector<16x128xf32>, vector<128x128xf32>, vector<16x128xf32> -> vector<16x128xf32>
    %c5_35 = arith.constant 5 : index
    %c0_36 = arith.constant 0 : index
    %43 = vector.load %arg3[%c5_35, %c0_36] : memref<8x128xf32, #tpu.memory_space<vmem>>, vector<1x128xf32>
    %44 = vector.broadcast %43 : vector<1x128xf32> to vector<16x128xf32>
    %45 = arith.addf %42, %44 : vector<16x128xf32>
    %c0_37 = arith.constant 0 : index
    %c0_38 = arith.constant 0 : index
    %46 = vector.load %arg5[%c0_37, %c0_38] : memref<16x128xf32, #tpu.memory_space<vmem>>, vector<16x128xf32>
    tpu.vector_store %arg5[%c0_37, %c0_38], %45 {strides = array<i32>} : memref<16x128xf32, #tpu.memory_space<vmem>>, vector<16x128xf32>,
    return
  }
  func.func @transform_0(%arg0: i32) -> (i32, i32) {
    %c0_i32 = arith.constant 0 : i32
    %c0_i32_0 = arith.constant 0 : i32
    return %arg0, %c0_i32 : i32, i32
  }
  func.func @transform_1(%arg0: i32) -> (i32, i32, i32) {
    %c0_i32 = arith.constant 0 : i32
    %c0_i32_0 = arith.constant 0 : i32
    %c0_i32_1 = arith.constant 0 : i32
    %c0_i32_2 = arith.constant 0 : i32
    return %c0_i32, %c0_i32_0, %c0_i32_1 : i32, i32, i32
  }
  func.func @transform_2(%arg0: i32) -> (i32, i32) {
    %c0_i32 = arith.constant 0 : i32
    %c0_i32_0 = arith.constant 0 : i32
    %c0_i32_1 = arith.constant 0 : i32
    return %c0_i32, %c0_i32_0 : i32, i32
  }
  func.func @transform_3(%arg0: i32) -> (i32, i32) {
    %c0_i32 = arith.constant 0 : i32
    %c0_i32_0 = arith.constant 0 : i32
    return %arg0, %c0_i32 : i32, i32
  }
  func.func @transform_4(%arg0: i32) -> (i32, i32) {
    %c0_i32 = arith.constant 0 : i32
    %c0_i32_0 = arith.constant 0 : i32
    return %arg0, %c0_i32 : i32, i32
  }
}

</mosaic_0001>

<bundles_post_ra>
// kernel: tpu_custom_call.1
= control target key start
LH: loop header
LB: loop body
LE: loop exit
PB: predicated region body
PF: predicated region fallthrough
CT: control target
= control target key end

     0   :  { %10 = vsyncpa [#allocation3], 0  ;;  %s1438_s0 = inlined_call_operand.hbm [shape: f32[16,128], index: 0, kind: input, shape index: {}]   ;;  %s1439_s1 = inlined_call_operand.hbm [shape: f32[6,128,128], index: 1, kind: input, shape index: {}]   ;;  %s1440_s2 = inlined_call_operand.hbm [shape: f32[8,128], index: 2, kind: input, shape index: {}]   ;;  %s1441_s3 = inlined_call_operand.hbm [shape: f32[16,128], index: 3, kind: output, shape index: {0}]   ;;  %s1442_s4 = inlined_call_operand.hbm [shape: f32[16,128], index: 4, kind: output, shape index: {1}]  }
   0x1   :  { %11 = vsyncpa [#allocation6], 0 }
   0x2   :  { %12 = vsyncpa [#allocation4], 0 }
   0x3   :  { %13 = vsyncpa [#allocation10], 0  ;;  %s1327_s15 = smov [#allocation5]   ;;  %s1328_s17 = smov [#allocation2]  }
   0x4   :  { %s31_s16 = sshll.u32 %s1327_s15, 4  ;;  %s19_s18 = sshll.u32 %s1328_s17, 4  ;;  %s32_s16 = int_to_ptr.vmem [resolvable:$true] %s31_s16  ;;  %s1359_s18 = int_to_ptr.vmem [resolvable:$true] %s19_s18 }
   0x5   :  { %s1209_s21 = scalar_lea.hbm %s1439_s1, 12288 }
   0x6   :  { %p1210_p0 = scmp.ne.s32.totalorder %s1439_s1, %s1209_s21  ;;  %p1213_p1 = scmp.lt.u32.totalorder %s1209_s21, %s1439_s1 }
   0x8   :  { %p1215_p2 = pnand %p1213_p1, %p1210_p0 }
   0xa   :  { %1218 = shalt.err (!%p1215_p2)
}
   0xb   :  { %s1219_s26 = scalar_lea.vmem %s32_s16, 12288  ;;  %p1224_p4 = scmp.lt.s32.totalorder %s32_s16, %s32_s16 }
   0xc   :  { %p1220_p3 = scmp.ne.s32.totalorder %s32_s16, %s1219_s26  ;;  %p1225_p5 = scmp.lt.s32.totalorder %s1219_s26, %s1219_s26 }
   0xe   :  { %p1226_p6 = por %p1225_p5, %p1224_p4 }
  0x10   :  { %p1227_p7 = pnand %p1226_p6, %p1220_p3 }
  0x12   :  { %1230 = shalt.err (!%p1227_p7)
}
  0x13   :  { %s1329_s27 = smov 128   ;;  %s1330_s28 = smov 8  }
  0x14   :  { %37 = dma.hbm_to_vmem [thread:$0]  %s1439_s1, 12288, %s32_s16, [#allocation6], %s1329_s27, %s1329_s27, %s1330_s28  }
  0x15   :  { %s1231_s7 = scalar_lea.hbm %s1438_s0, 256 }
  0x16   :  { %p1232_p8 = scmp.ne.s32.totalorder %s1438_s0, %s1231_s7  ;;  %p1235_p9 = scmp.lt.u32.totalorder %s1231_s7, %s1438_s0 }
  0x18   :  { %p1237_p10 = pnand %p1235_p9, %p1232_p8 }
  0x1a   :  { %1240 = shalt.err (!%p1237_p10)
}
  0x1b   :  { %s1241_s12 = scalar_lea.vmem %s1359_s18, 256  ;;  %p1246_p12 = scmp.lt.s32.totalorder %s1359_s18, %s1359_s18 }
  0x1c   :  { %p1242_p11 = scmp.ne.s32.totalorder %s1359_s18, %s1241_s12  ;;  %p1247_p13 = scmp.lt.s32.totalorder %s1241_s12, %s1241_s12 }
  0x1e   :  { %p1248_p0 = por %p1247_p13, %p1246_p12 }
  0x20   :  { %p1249_p1 = pnand %p1248_p0, %p1242_p11 }
  0x22   :  { %1252 = shalt.err (!%p1249_p1)
}
  0x23   :  { %25 = dma.hbm_to_vmem [thread:$0]  %s1438_s0, 256, %s1359_s18, [#allocation3], %s1329_s27, %s1329_s27, %s1330_s28  }
  0x24   :  { %s1331_s14 = smov [#allocation7]   ;;  %s1253_s19 = scalar_lea.hbm %s1440_s2, 128 }
  0x25   :  { %s44_s15 = sshll.u32 %s1331_s14, 4  ;;  %p1254_p2 = scmp.ne.s32.totalorder %s1440_s2, %s1253_s19  ;;  %s45_s15 = int_to_ptr.vmem [resolvable:$true] %s44_s15 }
  0x26   :  { %p1257_p3 = scmp.lt.u32.totalorder %s1253_s19, %s1440_s2 }
  0x28   :  { %p1259_p4 = pnand %p1257_p3, %p1254_p2 }
  0x2a   :  { %1262 = shalt.err (!%p1259_p4)
}
  0x2b   :  { %s1263_s24 = scalar_lea.vmem %s45_s15, 128  ;;  %p1268_p6 = scmp.lt.s32.totalorder %s45_s15, %s45_s15 }
  0x2c   :  { %p1264_p5 = scmp.ne.s32.totalorder %s45_s15, %s1263_s24  ;;  %p1269_p7 = scmp.lt.s32.totalorder %s1263_s24, %s1263_s24 }
  0x2e   :  { %p1270_p8 = por %p1269_p7, %p1268_p6 }
  0x30   :  { %p1271_p9 = pnand %p1270_p8, %p1264_p5 }
  0x32   :  { %1274 = shalt.err (!%p1271_p9)
}
  0x33   :  { %47 = dma.hbm_to_vmem [thread:$0]  %s1440_s2, 128, %s45_s15, [#allocation6]  }
  0x34   :  { %1319 = dma.done.wait [#allocation3], 256  }
  0x35   :  { %1320 = vsyncadd [#allocation3], 4294967040 }
  0x36   :  { %1321 = dma.done.wait [#allocation6], 12416  }
  0x37   :  { %1322 = vsyncadd [#allocation6], 4294954880  ;;  %v59_v0 = vld [vmem:[#allocation5] sm:$0xff]  ;;  %v60_v1 = vld [vmem:[#allocation5 + $0x8] sm:$0xff]  ;;  %s1332_s2 = smov [#allocation8]  }
  0x38   :  { %v61_v2 = vld [vmem:[#allocation5 + $0x10] sm:$0xff]  ;;  %v1010_v3 = vpack.c.bf16 %v60_v1, %v59_v0  ;;  %v62_v4 = vld [vmem:[#allocation5 + $0x18] sm:$0xff]  ;;  %v63_v6 = vld [vmem:[#allocation5 + $0x20] sm:$0xff]  ;;  %s657_s25 = sshll.u32 %s1332_s2, 4  ;;  %s658_s25 = int_to_ptr.vmem [resolvable:$true] %s657_s25 }
  0x39   :  { %v1014_v5 = vpack.c.bf16 %v62_v4, %v61_v2  ;;  %v64_v7 = vld [vmem:[#allocation5 + $0x28] sm:$0xff]  ;;  %v65_v9 = vld [vmem:[#allocation5 + $0x30] sm:$0xff]  ;;  %v66_v10 = vld [vmem:[#allocation5 + $0x38] sm:$0xff]  ;;  %s1275_s26 = scalar_lea.vmem %s658_s25, 256  ;;  %p1280_p11 = scmp.lt.s32.totalorder %s658_s25, %s658_s25 }
  0x3a   :  { %1011 = vmatprep.subr.bf16.mxu0 %v1010_v3  ;;  %v1018_v8 = vpack.c.bf16 %v64_v7, %v63_v6  ;;  %v57_v11 = vld [vmem:[#allocation2] sm:$0xff]  ;;  %v158_v12 = vld [vmem:[#allocation5 + $0x80] sm:$0xff]  ;;  %v159_v13 = vld [vmem:[#allocation5 + $0x88] sm:$0xff]  ;;  %v1022_v20 = vpack.c.bf16 %v66_v10, %v65_v9  ;;  %p1276_p10 = scmp.ne.s32.totalorder %s658_s25, %s1275_s26  ;;  %p1281_p12 = scmp.lt.s32.totalorder %s1275_s26, %s1275_s26 }
  0x3b   :  { %1013 = vmatpush3.bf16.msra.mxu0 %v1010_v3  ;;  %832 = vmatprep.mubr.f32.mxu0 %v57_v11  ;;  %v160_v14 = vld [vmem:[#allocation5 + $0x90] sm:$0xff]  ;;  %v1042_v15 = vpack.c.bf16 %v159_v13, %v158_v12  ;;  %v161_v16 = vld [vmem:[#allocation5 + $0x98] sm:$0xff]  ;;  %v162_v18 = vld [vmem:[#allocation5 + $0xa0] sm:$0xff] }
  0x3c   :  { %1015 = vmatprep.subr.bf16.mxu0 %v1014_v5  ;;  %v1046_v17 = vpack.c.bf16 %v161_v16, %v160_v14  ;;  %v163_v19 = vld [vmem:[#allocation5 + $0xa8] sm:$0xff]  ;;  %v67_v21 = vld [vmem:[#allocation5 + $0x40] sm:$0xff]  ;;  %v164_v24 = vld [vmem:[#allocation5 + $0xb0] sm:$0xff]  ;;  %p1282_p13 = por %p1281_p12, %p1280_p11 }
  0x3d   :  { %1043 = vmatprep.subr.bf16.mxu1 %v1042_v15  ;;  %v68_v22 = vld [vmem:[#allocation5 + $0x48] sm:$0xff]  ;;  %v1050_v23 = vpack.c.bf16 %v163_v19, %v162_v18  ;;  %v165_v25 = vld [vmem:[#allocation5 + $0xb8] sm:$0xff]  ;;  %v69_v27 = vld [vmem:[#allocation5 + $0x50] sm:$0xff] }
  0x3e   :  { %1045 = vmatpush3.bf16.msra.mxu1 %v1042_v15  ;;  %v1026_v26 = vpack.c.bf16 %v68_v22, %v67_v21  ;;  %v70_v28 = vld [vmem:[#allocation5 + $0x58] sm:$0xff]  ;;  %v1054_v29 = vpack.c.bf16 %v165_v25, %v164_v24  ;;  %v166_v30 = vld [vmem:[#allocation5 + $0xc0] sm:$0xff]  ;;  %v167_v31 = vld [vmem:[#allocation5 + $0xc8] sm:$0xff]  ;;  %p1283_p0 = pnand %p1282_p13, %p1276_p10 }
  0x3f   :  { %1017 = vmatpush3.bf16.msra.mxu0 %v1014_v5  ;;  %1047 = vmatprep.subr.bf16.mxu1 %v1046_v17  ;;  %v1030_v32 = vpack.c.bf16 %v70_v28, %v69_v27  ;;  %v71_v33 = vld [vmem:[#allocation5 + $0x60] sm:$0xff]  ;;  %v72_v34 = vld [vmem:[#allocation5 + $0x68] sm:$0xff]  ;;  %v1058_v35 = vpack.c.bf16 %v167_v31, %v166_v30  ;;  %v168_v36 = vld [vmem:[#allocation5 + $0xd0] sm:$0xff] }
  0x40   :  { %1019 = vmatprep.subr.bf16.mxu0 %v1018_v8  ;;  %v169_v37 = vld [vmem:[#allocation5 + $0xd8] sm:$0xff]  ;;  %v1034_v38 = vpack.c.bf16 %v72_v34, %v71_v33  ;;  %v73_v39 = vld [vmem:[#allocation5 + $0x70] sm:$0xff]  ;;  %v170_v42 = vld [vmem:[#allocation5 + $0xe0] sm:$0xff] }
  0x41   :  { %v74_v40 = vld [vmem:[#allocation5 + $0x78] sm:$0xff]  ;;  %v1062_v41 = vpack.c.bf16 %v169_v37, %v168_v36  ;;  %v171_v43 = vld [vmem:[#allocation5 + $0xe8] sm:$0xff]  ;;  %v172_v47 = vld [vmem:[#allocation5 + $0xf0] sm:$0xff] }
  0x42   :  { %1049 = vmatpush3.bf16.msra.mxu1 %v1046_v17  ;;  %v1038_v44 = vpack.c.bf16 %v74_v40, %v73_v39  ;;  %v1066_v45 = vpack.c.bf16 %v171_v43, %v170_v42  ;;  %v58_v46 = vld [vmem:[#allocation2 + $0x8] sm:$0xff]  ;;  %v257_v50 = vld [vmem:[#allocation5 + $0x100] sm:$0xff]  ;;  %v258_v51 = vld [vmem:[#allocation5 + $0x108] sm:$0xff] }
  0x43   :  { %1021 = vmatpush3.bf16.msra.mxu0 %v1018_v8  ;;  %1051 = vmatprep.subr.bf16.mxu1 %v1050_v23  ;;  %v173_v48 = vld [vmem:[#allocation5 + $0xf8] sm:$0xff]  ;;  %v259_v52 = vld [vmem:[#allocation5 + $0x110] sm:$0xff]  ;;  %v1074_v53 = vpack.c.bf16 %v258_v51, %v257_v50  ;;  %v261_v56 = vld [vmem:[#allocation5 + $0x120] sm:$0xff] }
  0x44   :  { %1023 = vmatprep.subr.bf16.mxu0 %v1022_v20  ;;  %v1070_v49 = vpack.c.bf16 %v173_v48, %v172_v47  ;;  %v260_v54 = vld [vmem:[#allocation5 + $0x118] sm:$0xff]  ;;  %v262_v57 = vld [vmem:[#allocation5 + $0x128] sm:$0xff]  ;;  %v263_v59 = vld [vmem:[#allocation5 + $0x130] sm:$0xff] }
  0x45   :  { %v1078_v55 = vpack.c.bf16 %v260_v54, %v259_v52  ;;  %v1082_v58 = vpack.c.bf16 %v262_v57, %v261_v56  ;;  %v264_v60 = vld [vmem:[#allocation5 + $0x138] sm:$0xff]  ;;  %v265_v62 = vld [vmem:[#allocation5 + $0x140] sm:$0xff]  ;;  %v266_v63 = vld [vmem:[#allocation5 + $0x148] sm:$0xff] }
  0x46   :  { %1053 = vmatpush3.bf16.msra.mxu1 %v1050_v23  ;;  %v1086_v61 = vpack.c.bf16 %v264_v60, %v263_v59  ;;  %v1090_v0 = vpack.c.bf16 %v266_v63, %v265_v62  ;;  %v267_v1 = vld [vmem:[#allocation5 + $0x150] sm:$0xff]  ;;  %v268_v2 = vld [vmem:[#allocation5 + $0x158] sm:$0xff]  ;;  %v269_v4 = vld [vmem:[#allocation5 + $0x160] sm:$0xff] }
  0x47   :  { %1025 = vmatpush3.bf16.msra.mxu0 %v1022_v20  ;;  %1055 = vmatprep.subr.bf16.mxu1 %v1054_v29  ;;  %v1094_v3 = vpack.c.bf16 %v268_v2, %v267_v1  ;;  %v270_v5 = vld [vmem:[#allocation5 + $0x168] sm:$0xff]  ;;  %v686_v7 = vld [vmem:[#allocation7] ss:$0 sm:$0xff]  ;;  %v271_v14 = vld [vmem:[#allocation5 + $0x170] sm:$0xff] }
  0x48   :  { %1027 = vmatprep.subr.bf16.mxu0 %v1026_v26  ;;  %v1098_v6 = vpack.c.bf16 %v270_v5, %v269_v4  ;;  %v272_v15 = vld [vmem:[#allocation5 + $0x178] sm:$0xff]  ;;  %v356_v17 = vld [vmem:[#allocation5 + $0x180] sm:$0xff]  ;;  %v357_v18 = vld [vmem:[#allocation5 + $0x188] sm:$0xff] }
  0x49   :  { %v1102_v16 = vpack.c.bf16 %v272_v15, %v271_v14  ;;  %v358_v19 = vld [vmem:[#allocation5 + $0x190] sm:$0xff]  ;;  %v1106_v20 = vpack.c.bf16 %v357_v18, %v356_v17  ;;  %v359_v21 = vld [vmem:[#allocation5 + $0x198] sm:$0xff]  ;;  %v360_v23 = vld [vmem:[#allocation5 + $0x1a0] sm:$0xff] }
  0x4a   :  { %1057 = vmatpush3.bf16.msra.mxu1 %v1054_v29  ;;  %v1110_v22 = vpack.c.bf16 %v359_v21, %v358_v19  ;;  %v361_v24 = vld [vmem:[#allocation5 + $0x1a8] sm:$0xff]  ;;  %v363_v27 = vld [vmem:[#allocation5 + $0x1b8] sm:$0xff]  ;;  %v364_v29 = vld [vmem:[#allocation5 + $0x1c0] sm:$0xff] }
  0x4b   :  { %1029 = vmatpush3.bf16.msra.mxu0 %v1026_v26  ;;  %1059 = vmatprep.subr.bf16.mxu1 %v1058_v35  ;;  %v1114_v25 = vpack.c.bf16 %v361_v24, %v360_v23  ;;  %v362_v26 = vld [vmem:[#allocation5 + $0x1b0] sm:$0xff]  ;;  %v365_v30 = vld [vmem:[#allocation5 + $0x1c8] sm:$0xff]  ;;  %v367_v33 = vld [vmem:[#allocation5 + $0x1d8] sm:$0xff] }
  0x4c   :  { %1031 = vmatprep.subr.bf16.mxu0 %v1030_v32  ;;  %v1118_v28 = vpack.c.bf16 %v363_v27, %v362_v26  ;;  %v1122_v31 = vpack.c.bf16 %v365_v30, %v364_v29  ;;  %v369_v36 = vld [vmem:[#allocation5 + $0x1e8] sm:$0xff]  ;;  %v455_v48 = vld [vmem:[#allocation5 + $0x200] sm:$0xff]  ;;  %v457_v50 = vld [vmem:[#allocation5 + $0x210] sm:$0xff] }
  0x4d   :  { %v458_v52 = vld [vmem:[#allocation5 + $0x218] sm:$0xff]  ;;  %v459_v54 = vld [vmem:[#allocation5 + $0x220] sm:$0xff]  ;;  %v461_v57 = vld [vmem:[#allocation5 + $0x230] sm:$0xff] }
  0x4e   :  { %1061 = vmatpush3.bf16.msra.mxu1 %v1058_v35  ;;  %v368_v35 = vld [vmem:[#allocation5 + $0x1e0] sm:$0xff]  ;;  %v465_v63 = vld [vmem:[#allocation5 + $0x250] sm:$0xff]  ;;  %v555_v14 = vld [vmem:[#allocation5 + $0x288] sm:$0xff] }
  0x4f   :  { %1033 = vmatpush3.bf16.msra.mxu0 %v1030_v32  ;;  %1063 = vmatprep.subr.bf16.mxu1 %v1062_v41  ;;  %v366_v32 = vld [vmem:[#allocation5 + $0x1d0] sm:$0xff]  ;;  %v1130_v37 = vpack.c.bf16 %v369_v36, %v368_v35  ;;  %v463_v60 = vld [vmem:[#allocation5 + $0x240] sm:$0xff]  ;;  %v557_v17 = vld [vmem:[#allocation5 + $0x298] sm:$0xff] }
  0x50   :  { %1035 = vmatprep.subr.bf16.mxu0 %v1034_v38  ;;  %v1126_v34 = vpack.c.bf16 %v367_v33, %v366_v32  ;;  %v467_v2 = vld [vmem:[#allocation5 + $0x260] sm:$0xff]  ;;  %v556_v15 = vld [vmem:[#allocation5 + $0x290] sm:$0xff]  ;;  %v561_v23 = vld [vmem:[#allocation5 + $0x2b8] sm:$0xff] }
  0x51   :  { %v688_v5 = vld [vmem:[#allocation7 + $0x2] ss:$0 sm:$0xff]  ;;  %v1174_v18 = vpack.c.bf16 %v557_v17, %v556_v15  ;;  %v563_v26 = vld [vmem:[#allocation5 + $0x2c8] sm:$0xff]  ;;  %v565_v29 = vld [vmem:[#allocation5 + $0x2d8] sm:$0xff] }
  0x52   :  { %1065 = vmatpush3.bf16.msra.mxu1 %v1062_v41  ;;  %v558_v19 = vld [vmem:[#allocation5 + $0x2a0] sm:$0xff]  ;;  %v567_v32 = vld [vmem:[#allocation5 + $0x2e8] sm:$0xff] }
  0x53   :  { %1037 = vmatpush3.bf16.msra.mxu0 %v1034_v38  ;;  %1067 = vmatprep.subr.bf16.mxu1 %v1066_v45  ;;  %v687_v38 = vld [vmem:[#allocation7 + $0x1] ss:$0 sm:$0xff] }
  0x54   :  { %1039 = vmatprep.subr.bf16.mxu0 %v1038_v44 }
  0x56   :  { %1069 = vmatpush3.bf16.msra.mxu1 %v1066_v45  ;;  %v370_v45 = vld [vmem:[#allocation5 + $0x1f0] sm:$0xff] }
  0x57   :  { %1041 = vmatpush3.bf16.msra.mxu0 %v1038_v44  ;;  %1071 = vmatprep.subr.bf16.mxu1 %v1070_v49 }
  0x58   :  { %1075 = vmatprep.subr.bf16.mxu0 %v1074_v53 }
  0x5a   :  { %833 = vmatmul.mubr.f32.vlgmr.msra.gmra.mrb[0].mxu0 %v58_v46  ;;  %1073 = vmatpush3.bf16.msra.mxu1 %v1070_v49  ;;  %v371_v46 = vld [vmem:[#allocation5 + $0x1f8] sm:$0xff]  ;;  %v456_v49 = vld [vmem:[#allocation5 + $0x208] sm:$0xff] }
  0x5b   :  { %1077 = vmatpush3.bf16.msra.mxu0 %v1074_v53  ;;  %1107 = vmatprep.subr.bf16.mxu1 %v1106_v20  ;;  %v1134_v47 = vpack.c.bf16 %v371_v46, %v370_v45  ;;  %v1138_v51 = vpack.c.bf16 %v456_v49, %v455_v48  ;;  %v1142_v53 = vpack.c.bf16 %v458_v52, %v457_v50 }
  0x5c   :  { %1079 = vmatprep.subr.bf16.mxu0 %v1078_v55 }
  0x5f   :  { %1081 = vmatpush3.bf16.msra.mxu0 %v1078_v55  ;;  %v460_v55 = vld [vmem:[#allocation5 + $0x228] sm:$0xff] }
  0x60   :  { %1083 = vmatprep.subr.bf16.mxu0 %v1082_v58  ;;  %v1146_v56 = vpack.c.bf16 %v460_v55, %v459_v54 }
  0x63   :  { %1085 = vmatpush3.bf16.msra.mxu0 %v1082_v58  ;;  %v462_v58 = vld [vmem:[#allocation5 + $0x238] sm:$0xff] }
  0x64   :  { %1087 = vmatprep.subr.bf16.mxu0 %v1086_v61  ;;  %v1150_v59 = vpack.c.bf16 %v462_v58, %v461_v57 }
  0x67   :  { %1089 = vmatpush3.bf16.msra.mxu0 %v1086_v61  ;;  %v464_v61 = vld [vmem:[#allocation5 + $0x248] sm:$0xff] }
  0x68   :  { %1091 = vmatprep.subr.bf16.mxu0 %v1090_v0  ;;  %v1154_v62 = vpack.c.bf16 %v464_v61, %v463_v60 }
  0x6b   :  { %1093 = vmatpush3.bf16.msra.mxu0 %v1090_v0  ;;  %v466_v0 = vld [vmem:[#allocation5 + $0x258] sm:$0xff] }
  0x6c   :  { %1095 = vmatprep.subr.bf16.mxu0 %v1094_v3  ;;  %v1158_v1 = vpack.c.bf16 %v466_v0, %v465_v63 }
  0x6f   :  { %1097 = vmatpush3.bf16.msra.mxu0 %v1094_v3  ;;  %v468_v3 = vld [vmem:[#allocation5 + $0x268] sm:$0xff] }
  0x70   :  { %1099 = vmatprep.subr.bf16.mxu0 %v1098_v6  ;;  %v1162_v4 = vpack.c.bf16 %v468_v3, %v467_v2 }
  0x73   :  { %1101 = vmatpush3.bf16.msra.mxu0 %v1098_v6 }
  0x74   :  { %1103 = vmatprep.subr.bf16.mxu0 %v1102_v16 }
  0x77   :  { %1105 = vmatpush3.bf16.msra.mxu0 %v1102_v16 }
  0x78   :  { %1139 = vmatprep.subr.bf16.mxu0 %v1138_v51 }
 0x12d   :  { %v834_v8 = vpop.f32.mrb[0].mxu0 }
 0x12e   :  { %v152_v9 = vadd.f32 %v834_v8, %v686_v7  ;;  %v146_v10 = vpop.f32.mrb[1].mxu0 }
 0x12f   :  { %v147_v11 = vadd.f32 %v686_v7, %v146_v10  ;;  %v469_v10 = vld [vmem:[#allocation5 + $0x270] sm:$0xff] }
 0x130   :  { %v156_v13 = vmax.f32 %v152_v9, 0.0 }
 0x131   :  { %v155_v12 = vmax.f32 %v147_v11, 0.0  ;;  %v470_v11 = vld [vmem:[#allocation5 + $0x278] sm:$0xff] }
 0x133   :  { %867 = vmatprep.mubr.f32.mxu1 %v155_v12  ;;  %v1166_v12 = vpack.c.bf16 %v470_v11, %v469_v10 }
 0x134   :  { %868 = vmatmul.mubr.f32.vlgmr.msra.gmra.mrb[0].mxu1 %v156_v13  ;;  %v554_v13 = vld [vmem:[#allocation5 + $0x280] sm:$0xff] }
 0x135   :  { %1109 = vmatpush3.bf16.msra.mxu1 %v1106_v20  ;;  %v1170_v16 = vpack.c.bf16 %v555_v14, %v554_v13  ;;  %v559_v20 = vld [vmem:[#allocation5 + $0x2a8] sm:$0xff] }
 0x136   :  { %1111 = vmatprep.subr.bf16.mxu1 %v1110_v22  ;;  %v1178_v21 = vpack.c.bf16 %v559_v20, %v558_v19 }
 0x139   :  { %1113 = vmatpush3.bf16.msra.mxu1 %v1110_v22  ;;  %v560_v22 = vld [vmem:[#allocation5 + $0x2b0] sm:$0xff] }
 0x13a   :  { %1115 = vmatprep.subr.bf16.mxu1 %v1114_v25  ;;  %v1182_v24 = vpack.c.bf16 %v561_v23, %v560_v22 }
 0x13d   :  { %1117 = vmatpush3.bf16.msra.mxu1 %v1114_v25  ;;  %v562_v25 = vld [vmem:[#allocation5 + $0x2c0] sm:$0xff] }
 0x13e   :  { %1119 = vmatprep.subr.bf16.mxu1 %v1118_v28  ;;  %v1186_v27 = vpack.c.bf16 %v563_v26, %v562_v25 }
 0x141   :  { %1121 = vmatpush3.bf16.msra.mxu1 %v1118_v28  ;;  %v564_v28 = vld [vmem:[#allocation5 + $0x2d0] sm:$0xff] }
 0x142   :  { %1123 = vmatprep.subr.bf16.mxu1 %v1122_v31  ;;  %v1190_v30 = vpack.c.bf16 %v565_v29, %v564_v28 }
 0x145   :  { %1125 = vmatpush3.bf16.msra.mxu1 %v1122_v31  ;;  %v566_v31 = vld [vmem:[#allocation5 + $0x2e0] sm:$0xff] }
 0x146   :  { %1127 = vmatprep.subr.bf16.mxu1 %v1126_v34  ;;  %v1194_v33 = vpack.c.bf16 %v567_v32, %v566_v31 }
 0x149   :  { %1129 = vmatpush3.bf16.msra.mxu1 %v1126_v34  ;;  %v689_v34 = vld [vmem:[#allocation7 + $0x3] ss:$0 sm:$0xff] }
 0x14a   :  { %1131 = vmatprep.subr.bf16.mxu1 %v1130_v37 }
 0x14d   :  { %1133 = vmatpush3.bf16.msra.mxu1 %v1130_v37 }
 0x14e   :  { %1135 = vmatprep.subr.bf16.mxu1 %v1134_v47 }
 0x151   :  { %1137 = vmatpush3.bf16.msra.mxu1 %v1134_v47 }
 0x152   :  { %1171 = vmatprep.subr.bf16.mxu1 %v1170_v16 }
 0x207   :  { %v869_v39 = vpop.f32.mrb[0].mxu1 }
 0x208   :  { %v251_v40 = vadd.f32 %v869_v39, %v687_v38  ;;  %v245_v41 = vpop.f32.mrb[1].mxu1 }
 0x209   :  { %v246_v42 = vadd.f32 %v687_v38, %v245_v41  ;;  %v568_v41 = vld [vmem:[#allocation5 + $0x2f0] sm:$0xff] }
 0x20a   :  { %v255_v44 = vmax.f32 %v251_v40, 0.0 }
 0x20b   :  { %v254_v43 = vmax.f32 %v246_v42, 0.0  ;;  %v569_v42 = vld [vmem:[#allocation5 + $0x2f8] sm:$0xff] }
 0x20d   :  { %902 = vmatprep.mubr.f32.mxu0 %v254_v43  ;;  %v1198_v43 = vpack.c.bf16 %v569_v42, %v568_v41 }
 0x20e   :  { %903 = vmatmul.mubr.f32.vlgmr.msra.gmra.mrb[2].mxu0 %v255_v44  ;;  %v690_v44 = vld [vmem:[#allocation7 + $0x4] ss:$0 sm:$0xff] }
 0x20f   :  { %1141 = vmatpush3.bf16.msra.mxu0 %v1138_v51 }
 0x210   :  { %1143 = vmatprep.subr.bf16.mxu0 %v1142_v53 }
 0x213   :  { %1145 = vmatpush3.bf16.msra.mxu0 %v1142_v53 }
 0x214   :  { %1147 = vmatprep.subr.bf16.mxu0 %v1146_v56 }
 0x217   :  { %1149 = vmatpush3.bf16.msra.mxu0 %v1146_v56 }
 0x218   :  { %1151 = vmatprep.subr.bf16.mxu0 %v1150_v59 }
 0x21b   :  { %1153 = vmatpush3.bf16.msra.mxu0 %v1150_v59 }
 0x21c   :  { %1155 = vmatprep.subr.bf16.mxu0 %v1154_v62 }
 0x21f   :  { %1157 = vmatpush3.bf16.msra.mxu0 %v1154_v62 }
 0x220   :  { %1159 = vmatprep.subr.bf16.mxu0 %v1158_v1 }
 0x223   :  { %1161 = vmatpush3.bf16.msra.mxu0 %v1158_v1 }
 0x224   :  { %1163 = vmatprep.subr.bf16.mxu0 %v1162_v4 }
 0x227   :  { %1165 = vmatpush3.bf16.msra.mxu0 %v1162_v4 }
 0x228   :  { %1167 = vmatprep.subr.bf16.mxu0 %v1166_v12 }
 0x22b   :  { %1169 = vmatpush3.bf16.msra.mxu0 %v1166_v12 }
 0x2e1   :  { %v904_v6 = vpop.f32.mrb[2].mxu0 }
 0x2e2   :  { %v350_v7 = vadd.f32 %v904_v6, %v688_v5  ;;  %v344_v8 = vpop.f32.mrb[3].mxu0 }
 0x2e3   :  { %v345_v9 = vadd.f32 %v688_v5, %v344_v8 }
 0x2e4   :  { %354 = vst [vmem:[#allocation8 + $0x8] sm:$0xff] %v350_v7 }
 0x2e5   :  { %353 = vst [vmem:[#allocation8] sm:$0xff] %v345_v9  ;;  %937 = vmatprep.mubr.f32.mxu1 %v345_v9 }
 0x2e6   :  { %938 = vmatmul.mubr.f32.vlgmr.msra.gmra.mrb[2].mxu1 %v350_v7 }
 0x2e7   :  { %1173 = vmatpush3.bf16.msra.mxu1 %v1170_v16 }
 0x2e8   :  { %1175 = vmatprep.subr.bf16.mxu1 %v1174_v18 }
 0x2eb   :  { %1177 = vmatpush3.bf16.msra.mxu1 %v1174_v18 }
 0x2ec   :  { %1179 = vmatprep.subr.bf16.mxu1 %v1178_v21 }
 0x2ef   :  { %1181 = vmatpush3.bf16.msra.mxu1 %v1178_v21 }
 0x2f0   :  { %1183 = vmatprep.subr.bf16.mxu1 %v1182_v24 }
 0x2f3   :  { %1185 = vmatpush3.bf16.msra.mxu1 %v1182_v24 }
 0x2f4   :  { %1187 = vmatprep.subr.bf16.mxu1 %v1186_v27 }
 0x2f7   :  { %1189 = vmatpush3.bf16.msra.mxu1 %v1186_v27 }
 0x2f8   :  { %1191 = vmatprep.subr.bf16.mxu1 %v1190_v30 }
 0x2fb   :  { %1193 = vmatpush3.bf16.msra.mxu1 %v1190_v30 }
 0x2fc   :  { %1195 = vmatprep.subr.bf16.mxu1 %v1194_v33 }
 0x2ff   :  { %1197 = vmatpush3.bf16.msra.mxu1 %v1194_v33 }
 0x300   :  { %1199 = vmatprep.subr.bf16.mxu1 %v1198_v43 }
 0x303   :  { %1201 = vmatpush3.bf16.msra.mxu1 %v1198_v43 }
 0x3b9   :  { %v939_v35 = vpop.f32.mrb[2].mxu1 }
 0x3ba   :  { %v449_v36 = vadd.f32 %v939_v35, %v689_v34  ;;  %v443_v37 = vpop.f32.mrb[3].mxu1 }
 0x3bb   :  { %v444_v38 = vadd.f32 %v689_v34, %v443_v37 }
 0x3bc   :  { %v453_v40 = vmax.f32 %v449_v36, 0.0 }
 0x3bd   :  { %v452_v39 = vmax.f32 %v444_v38, 0.0 }
 0x3bf   :  { %972 = vmatprep.mubr.f32.mxu0 %v452_v39 }
 0x3c0   :  { %973 = vmatmul.mubr.f32.vlgmr.msra.gmra.mrb[4].mxu0 %v453_v40 }
 0x493   :  { %v974_v45 = vpop.f32.mrb[4].mxu0 }
 0x494   :  { %v548_v46 = vadd.f32 %v974_v45, %v690_v44  ;;  %v542_v47 = vpop.f32.mrb[5].mxu0 }
 0x495   :  { %v543_v48 = vadd.f32 %v690_v44, %v542_v47 }
 0x496   :  { %v552_v50 = vmax.f32 %v548_v46, 0.0 }
 0x497   :  { %v551_v49 = vmax.f32 %v543_v48, 0.0 }
 0x499   :  { %1007 = vmatprep.mubr.f32.mxu1 %v551_v49 }
 0x49a   :  { %1008 = vmatmul.mubr.f32.vlgmr.msra.gmra.mrb[4].mxu1 %v552_v50 }
 0x49b   :  { %1286 = shalt.err (!%p1283_p0)
}
 0x49c   :  { %s1287_s5 = scalar_lea.hbm %s1441_s3, 256 }
 0x49d   :  { %p1288_p1 = scmp.ne.s32.totalorder %s1441_s3, %s1287_s5  ;;  %p1291_p2 = scmp.lt.u32.totalorder %s1287_s5, %s1441_s3 }
 0x49f   :  { %p1293_p3 = pnand %p1291_p2, %p1288_p1 }
 0x4a1   :  { %1296 = shalt.err (!%p1293_p3)
}
 0x4a2   :  { %663 = dma.vmem_to_hbm [thread:$0]  %s658_s25, 256, %s1441_s3, [#allocation4], %s1329_s27, %s1329_s27, %s1330_s28   ;;  %v691_v51 = vld [vmem:[#allocation7 + $0x5] ss:$0 sm:$0xff] }
 0x4a3   :  { %s1333_s12 = smov [#allocation9]  }
 0x4a4   :  { %s669_s1 = sshll.u32 %s1333_s12, 4  ;;  %s670_s1 = int_to_ptr.vmem [resolvable:$true] %s669_s1 }
 0x4a5   :  { %s1297_s13 = scalar_lea.vmem %s670_s1, 256  ;;  %p1302_p5 = scmp.lt.s32.totalorder %s670_s1, %s670_s1 }
 0x4a6   :  { %p1298_p4 = scmp.ne.s32.totalorder %s670_s1, %s1297_s13  ;;  %p1303_p6 = scmp.lt.s32.totalorder %s1297_s13, %s1297_s13 }
 0x4a8   :  { %p1304_p7 = por %p1303_p6, %p1302_p5 }
 0x4aa   :  { %p1305_p8 = pnand %p1304_p7, %p1298_p4 }
 0x56d   :  { %v1009_v52 = vpop.f32.mrb[4].mxu1 }
 0x56e   :  { %v647_v53 = vadd.f32 %v1009_v52, %v691_v51  ;;  %v641_v54 = vpop.f32.mrb[5].mxu1 }
 0x56f   :  { %v642_v55 = vadd.f32 %v691_v51, %v641_v54 }
 0x570   :  { %651 = vst [vmem:[#allocation9 + $0x8] sm:$0xff] %v647_v53 }
 0x571   :  { %650 = vst [vmem:[#allocation9] sm:$0xff] %v642_v55 }
 0x572   :  { %1308 = shalt.err (!%p1305_p8)
}
 0x573   :  { %s1309_s3 = scalar_lea.hbm %s1442_s4, 256 }
 0x574   :  { %p1310_p9 = scmp.ne.s32.totalorder %s1442_s4, %s1309_s3  ;;  %p1313_p10 = scmp.lt.u32.totalorder %s1309_s3, %s1442_s4 }
 0x576   :  { %p1315_p11 = pnand %p1313_p10, %p1310_p9 }
 0x578   :  { %1318 = shalt.err (!%p1315_p11)
}
 0x579   :  { %675 = dma.vmem_to_hbm [thread:$0]  %s670_s1, 256, %s1442_s4, [#allocation10], %s1329_s27, %s1329_s27, %s1330_s28  }
 0x57a   :  { %1323 = dma.done.wait [#allocation4], 256  }
 0x57b   :  { %1324 = vsyncadd [#allocation4], 4294967040 }
 0x57c   :  { %1325 = dma.done.wait [#allocation10], 256  }
 0x57d   :  { %1326 = vsyncadd [#allocation10], 4294967040 }
 0x57e   :  { %682 = vsyncpa [#allocation3], 1 }
 0x57f   :  { %683 = vsyncpa [#allocation6], 1 }
 0x580   :  { %684 = vsyncpa [#allocation4], 1 }
 0x581   :  { %685 = vsyncpa [#allocation10], 1 }

</bundles_post_ra>
